<compile_context>
chip_gen: v7x
topology: tpu7x:2x2x1
jax: 0.10.0
libtpu: 0.0.40
codegen_flags: <defaults>
</compile_context>

<pallas_src>
import math
from functools import partial

import jax
import jax.numpy as jnp
from jax.experimental import pallas as pl
from jax.experimental.pallas import tpu as pltpu


def _resolve_shape(total, shape):
    """Resolve a single -1 entry like torch.Tensor.view does."""
    shape = list(shape)
    if shape.count(-1) > 1:
        raise ValueError("only one dimension can be inferred")
    if -1 in shape:
        idx = shape.index(-1)
        known = math.prod(s for i, s in enumerate(shape) if i != idx)
        if known == 0 or total % known != 0:
            raise ValueError(f"cannot reshape {total} elements into {shape}")
        shape[idx] = total // known
    if math.prod(shape) != total:
        raise ValueError(f"shape {shape} incompatible with {total} elements")
    return tuple(int(s) for s in shape)


_LANE_CANDIDATES = (1024, 512, 256, 128)
_MAX_DMA_CHUNKS = 4  # a few in-flight DMAs; each chunk is a contiguous region


def _plan_chunks(rows, max_chunks=_MAX_DMA_CHUNKS):
    """Split `rows` into up to `max_chunks` contiguous, nearly equal chunks."""
    n = max(1, min(max_chunks, rows))
    base, rem = divmod(rows, n)
    chunks, start = [], 0
    for i in range(n):
        size = base + (1 if i < rem else 0)
        chunks.append((start, size))
        start += size
    return chunks


def _make_dma_copy_kernel(chunks):
    """HBM->HBM streaming copy: start all chunk DMAs, then wait for all."""

    def kernel(x_hbm, o_hbm, sems):
        copies = []
        for idx, (start, size) in enumerate(chunks):
            cp = pltpu.make_async_copy(
                x_hbm.at[pl.ds(start, size), :],
                o_hbm.at[pl.ds(start, size), :],
                sems.at[idx],
            )
            cp.start()
            copies.append(cp)
        for cp in copies:
            cp.wait()

    return kernel


@partial(jax.jit, static_argnums=(1,))
def _view_copy_impl(x, out_shape):
    """Materialize the reshape via a direct HBM->HBM DMA copy."""
    total = math.prod(x.shape) if x.ndim > 0 else 1
    itemsize = jnp.dtype(x.dtype).itemsize

    lanes = next(c for c in _LANE_CANDIDATES if total % c == 0)
    rows = total // lanes
    slab = x.reshape(rows, lanes)  # metadata-only glue around the DMA

    chunks = _plan_chunks(rows)
    kernel = _make_dma_copy_kernel(chunks)

    out = pl.pallas_call(
        kernel,
        out_shape=jax.ShapeDtypeStruct((rows, lanes), x.dtype),
        in_specs=[pl.BlockSpec(memory_space=pl.ANY)],   # raw HBM ref, no auto-DMA
        out_specs=pl.BlockSpec(memory_space=pl.ANY),    # raw HBM ref, no auto-DMA
        scratch_shapes=[pltpu.SemaphoreType.DMA((len(chunks),))],
        cost_estimate=pl.CostEstimate(
            flops=0,
            transcendentals=0,
            bytes_accessed=2 * total * itemsize,
        ),
    )(slab)

    return out.reshape(out_shape)


def view_pallas(x, shape, *, force_copy=False):
    """Equivalent of torch.Tensor.view(*shape).

    Default path is a metadata-only reshape (matching view's zero-copy
    semantics for contiguous tensors).  `force_copy=True` materializes the
    result through the Pallas HBM->HBM DMA kernel.
    """
    total = math.prod(x.shape) if x.ndim > 0 else 1
    out_shape = _resolve_shape(total, shape)
    # TODO(synk): torch.view's contiguity-error semantics have no kernel
    # equivalent; JAX arrays behave as contiguous, so reshape is always valid.
    if not force_copy:
        return x.reshape(out_shape)
    if total == 0 or total % 128 != 0:
        # Ragged (non-lane-multiple) sizes: padding + slicing around a kernel
        # would triple HBM traffic, so use the metadata-only reshape instead.
        return x.reshape(out_shape)
    return _view_copy_impl(x, out_shape)


class View:
    """Mirror of the PyTorch module (no parameters)."""

    def __init__(self, shape, force_copy=False):
        self.shape = tuple(shape)
        self.force_copy = force_copy

    def __call__(self, x):
        return view_pallas(x, self.shape, force_copy=self.force_copy)


if __name__ == "__main__":
    key = jax.random.PRNGKey(0)

    # NCHW input: batch=2, channels=4, spatial=16x16 (2048 elements).
    x = jax.random.normal(key, (2, 4, 16, 16), dtype=jnp.float32)

    # Typical use of View: flatten per-batch features (fast metadata-only path).
    out = jax.block_until_ready(View((2, -1))(x))
    ref = x.reshape(2, -1)
    assert out.shape == (2, 4 * 16 * 16), out.shape
    assert out.dtype == x.dtype
    assert bool(jnp.all(out == ref))

    # Same flatten, but force the Pallas HBM->HBM DMA copy path.
    out_k = jax.block_until_ready(View((2, -1), force_copy=True)(x))
    assert out_k.shape == (2, 4 * 16 * 16)
    assert bool(jnp.all(out_k == ref))

    # Second target shape, same element count, through the kernel.
    out2 = jax.block_until_ready(View((4, 2, 16, 16), force_copy=True)(x))
    assert out2.shape == (4, 2, 16, 16)
    assert bool(jnp.all(out2 == x.reshape(4, 2, 16, 16)))

    # Larger slab (4 MiB f32 -> (1024, 1024) slab, 4 in-flight DMA chunks).
    y = jax.random.normal(jax.random.PRNGKey(0), (8, 32, 64, 64), dtype=jnp.float32)
    out3 = jax.block_until_ready(View((8, -1), force_copy=True)(y))
    assert out3.shape == (8, 32 * 64 * 64)
    assert bool(jnp.all(out3 == y.reshape(8, -1)))

    # Non-128-multiple element count: metadata-only fallback, no pad/slice passes.
    z = jax.random.normal(key, (3, 5, 7), dtype=jnp.float32)
    out4 = jax.block_until_ready(View((5, 21), force_copy=True)(z))
    assert out4.shape == (5, 21)
    assert bool(jnp.all(out4 == z.reshape(5, 21)))

    print("KERNEL_OK")
</pallas_src>

<mosaic_0001>
module attributes {stable_mosaic.version = 11 : i64} {
  func.func @kernel(%arg0: memref<2x1024xf32, #tpu.memory_space<any>>, %arg1: memref<2x1024xf32, #tpu.memory_space<any>>, %arg2: memref<2x!tpu.dma_semaphore, #tpu.memory_space<semaphore_mem>>) attributes {dimension_semantics = [], scalar_prefetch = 0 : i64, scratch_operands = 1 : i64, tpu.core_type = #tpu.core_type<tc>} {
    %c0_i32 = arith.constant 0 : i32
    %c0_i32_0 = arith.constant 0 : i32
    %c0_i32_1 = arith.constant 0 : i32
    %0 = tpu.memref_slice %arg0[%c0_i32_0, %c0_i32_1] : memref<2x1024xf32, #tpu.memory_space<any>> -> memref<1x1024xf32, #tpu.memory_space<any>>
    %c0_i32_2 = arith.constant 0 : i32
    %c0_i32_3 = arith.constant 0 : i32
    %1 = tpu.memref_slice %arg1[%c0_i32_2, %c0_i32_3] : memref<2x1024xf32, #tpu.memory_space<any>> -> memref<1x1024xf32, #tpu.memory_space<any>>
    %2 = tpu.memref_slice %arg2[%c0_i32] : memref<2x!tpu.dma_semaphore, #tpu.memory_space<semaphore_mem>> -> memref<1x!tpu.dma_semaphore, #tpu.memory_space<semaphore_mem>>
    %3 = tpu.memref_squeeze %2 : memref<1x!tpu.dma_semaphore, #tpu.memory_space<semaphore_mem>> -> memref<!tpu.dma_semaphore, #tpu.memory_space<semaphore_mem>>
    tpu.enqueue_dma source(%0 : memref<1x1024xf32, #tpu.memory_space<any>>) target(%1 : memref<1x1024xf32, #tpu.memory_space<any>>) target_semaphore(%3 : memref<!tpu.dma_semaphore, #tpu.memory_space<semaphore_mem>>)
    %c1_i32 = arith.constant 1 : i32
    %c1_i32_4 = arith.constant 1 : i32
    %c0_i32_5 = arith.constant 0 : i32
    %4 = tpu.memref_slice %arg0[%c1_i32_4, %c0_i32_5] : memref<2x1024xf32, #tpu.memory_space<any>> -> memref<1x1024xf32, #tpu.memory_space<any>>
    %c1_i32_6 = arith.constant 1 : i32
    %c0_i32_7 = arith.constant 0 : i32
    %5 = tpu.memref_slice %arg1[%c1_i32_6, %c0_i32_7] : memref<2x1024xf32, #tpu.memory_space<any>> -> memref<1x1024xf32, #tpu.memory_space<any>>
    %6 = tpu.memref_slice %arg2[%c1_i32] : memref<2x!tpu.dma_semaphore, #tpu.memory_space<semaphore_mem>> -> memref<1x!tpu.dma_semaphore, #tpu.memory_space<semaphore_mem>>
    %7 = tpu.memref_squeeze %6 : memref<1x!tpu.dma_semaphore, #tpu.memory_space<semaphore_mem>> -> memref<!tpu.dma_semaphore, #tpu.memory_space<semaphore_mem>>
    tpu.enqueue_dma source(%4 : memref<1x1024xf32, #tpu.memory_space<any>>) target(%5 : memref<1x1024xf32, #tpu.memory_space<any>>) target_semaphore(%7 : memref<!tpu.dma_semaphore, #tpu.memory_space<semaphore_mem>>)
    %c0_i32_8 = arith.constant 0 : i32
    %c0_i32_9 = arith.constant 0 : i32
    %c0_i32_10 = arith.constant 0 : i32
    %8 = tpu.memref_slice %arg0[%c0_i32_9, %c0_i32_10] : memref<2x1024xf32, #tpu.memory_space<any>> -> memref<1x1024xf32, #tpu.memory_space<any>>
    %c0_i32_11 = arith.constant 0 : i32
    %c0_i32_12 = arith.constant 0 : i32
    %9 = tpu.memref_slice %arg1[%c0_i32_11, %c0_i32_12] : memref<2x1024xf32, #tpu.memory_space<any>> -> memref<1x1024xf32, #tpu.memory_space<any>>
    %10 = tpu.memref_slice %arg2[%c0_i32_8] : memref<2x!tpu.dma_semaphore, #tpu.memory_space<semaphore_mem>> -> memref<1x!tpu.dma_semaphore, #tpu.memory_space<semaphore_mem>>
    %11 = tpu.memref_squeeze %10 : memref<1x!tpu.dma_semaphore, #tpu.memory_space<semaphore_mem>> -> memref<!tpu.dma_semaphore, #tpu.memory_space<semaphore_mem>>
    tpu.wait_dma2 semaphore(%11 : memref<!tpu.dma_semaphore, #tpu.memory_space<semaphore_mem>>) src(%8 : memref<1x1024xf32, #tpu.memory_space<any>>) dst(%9 : memref<1x1024xf32, #tpu.memory_space<any>>)
    %c1_i32_13 = arith.constant 1 : i32
    %c1_i32_14 = arith.constant 1 : i32
    %c0_i32_15 = arith.constant 0 : i32
    %12 = tpu.memref_slice %arg0[%c1_i32_14, %c0_i32_15] : memref<2x1024xf32, #tpu.memory_space<any>> -> memref<1x1024xf32, #tpu.memory_space<any>>
    %c1_i32_16 = arith.constant 1 : i32
    %c0_i32_17 = arith.constant 0 : i32
    %13 = tpu.memref_slice %arg1[%c1_i32_16, %c0_i32_17] : memref<2x1024xf32, #tpu.memory_space<any>> -> memref<1x1024xf32, #tpu.memory_space<any>>
    %14 = tpu.memref_slice %arg2[%c1_i32_13] : memref<2x!tpu.dma_semaphore, #tpu.memory_space<semaphore_mem>> -> memref<1x!tpu.dma_semaphore, #tpu.memory_space<semaphore_mem>>
    %15 = tpu.memref_squeeze %14 : memref<1x!tpu.dma_semaphore, #tpu.memory_space<semaphore_mem>> -> memref<!tpu.dma_semaphore, #tpu.memory_space<semaphore_mem>>
    tpu.wait_dma2 semaphore(%15 : memref<!tpu.dma_semaphore, #tpu.memory_space<semaphore_mem>>) src(%12 : memref<1x1024xf32, #tpu.memory_space<any>>) dst(%13 : memref<1x1024xf32, #tpu.memory_space<any>>)
    return
  }
}

</mosaic_0001>

<bundles_post_ra>
// kernel: _view_copy_impl.1
= control target key start
LH: loop header
LB: loop body
LE: loop exit
PB: predicated region body
PF: predicated region fallthrough
CT: control target
= control target key end

     0   :  { %s140_s0 = inlined_call_operand.vmem [shape: f32[2,1024], index: 0, kind: input, shape index: {}]   ;;  %s141_s1 = inlined_call_operand.hbm [shape: f32[2,1024], index: 1, kind: output, shape index: {}]  }
   0x1   :  { %s7_s8 = sshll.u32 %s140_s0, 4  ;;  %s11_s11 = scalar_lea.vmem %s140_s0, 1  ;;  %s8_s8 = int_to_ptr.vmem [resolvable:$true] %s7_s8 }
   0x2   :  { %s113_s14 = scalar_lea.hbm %s141_s1, 16  ;;  %s41_s15 = scalar_lea.vmem %s8_s8, 128 }
   0x3   :  { %p42_p0 = scmp.ne.s32.totalorder %s8_s8, %s41_s15  ;;  %s45_s16 = scalar_lea.vmem %s8_s8, 256 }
   0x4   :  { %p46_p1 = scmp.lt.s32.totalorder %s8_s8, %s8_s8  ;;  %p47_p2 = scmp.lt.s32.totalorder %s45_s16, %s41_s15 }
   0x6   :  { %p48_p3 = por %p47_p2, %p46_p1 }
   0x8   :  { %p49_p4 = pnand %p48_p3, %p42_p0 }
   0xa   :  { %52 = shalt.err (!%p49_p4)  }
   0xb   :  { %s53_s19 = scalar_lea.hbm %s141_s1, 128  ;;  %s55_s23 = scalar_lea.hbm %s141_s1, 256 }
   0xc   :  { %p54_p5 = scmp.ne.s32.totalorder %s141_s1, %s53_s19  ;;  %p56_p6 = scmp.lt.u32.totalorder %s55_s23, %s53_s19 }
   0xd   :  { %p57_p7 = scmp.lt.u32.totalorder %s53_s19, %s141_s1 }
   0xf   :  { %p58_p8 = por %p57_p7, %p56_p6 }
  0x11   :  { %p59_p9 = pnand %p58_p8, %p54_p5 }
  0x13   :  { %62 = shalt.err (!%p59_p9)  }
  0x14   :  { %s92_s26 = smov 32   ;;  %s93_s27 = smov 1  }
  0x15   :  { %10 = dma.vmem_to_hbm [thread:$0]  %s8_s8, 128, %s141_s1, [#allocation2], %s92_s26, %s92_s26, %s93_s27 }
  0x16   :  { %s15_s30 = sshll.u32 %s11_s11, 4  ;;  %s16_s30 = int_to_ptr.vmem [resolvable:$true] %s15_s30 }
  0x17   :  { %s63_s2 = scalar_lea.vmem %s16_s30, 128  ;;  %p68_p11 = scmp.lt.s32.totalorder %s16_s30, %s8_s8 }
  0x18   :  { %p64_p10 = scmp.ne.s32.totalorder %s16_s30, %s63_s2  ;;  %p69_p12 = scmp.lt.s32.totalorder %s45_s16, %s63_s2 }
  0x1a   :  { %p70_p13 = por %p69_p12, %p68_p11 }
  0x1c   :  { %p71_p0 = pnand %p70_p13, %p64_p10 }
  0x1e   :  { %74 = shalt.err (!%p71_p0)  }
  0x1f   :  { %s87_s5 = scalar_lea.hbm %s141_s1, 144  ;;  %p78_p2 = scmp.lt.u32.totalorder %s113_s14, %s141_s1 }
  0x20   :  { %p76_p1 = scmp.ne.s32.totalorder %s113_s14, %s87_s5  ;;  %p79_p3 = scmp.lt.u32.totalorder %s55_s23, %s87_s5 }
  0x21   :  { %p81_p5 = scmp.lt.u32.totalorder %s87_s5, %s113_s14 }
  0x22   :  { %p80_p4 = por %p79_p3, %p78_p2 }
  0x24   :  { %p82_p6 = por %p81_p5, %p80_p4 }
  0x26   :  { %p83_p7 = pnand %p82_p6, %p76_p1 }
  0x28   :  { %86 = shalt.err (!%p83_p7)  }
  0x29   :  { %18 = dma.vmem_to_hbm [thread:$0]  %s16_s30, 128, %s113_s14, [#allocation2 + $0x1], %s92_s26, %s92_s26, %s93_s27 }
  0x2a   :  { %88 = dma.done.wait [#allocation2], 128 }
  0x2b   :  { %89 = vsyncadd [#allocation2], 4294967168 }
  0x2c   :  { %90 = dma.done.wait [#allocation2 + $0x1], 128 }
  0x2d   :  { %91 = vsyncadd [#allocation2 + $0x1], 4294967168 }
  0x2e   :  { %24 = vsyncmov [#allocation2] }
  0x31   :  { %s25_s8 = vpop.sfrf %24 }
  0x32   :  { %p37_p8 = scmp.ne.s32.totalorder %s25_s8, 0 }
  0x34   :  { %29 = shalt.err (%p37_p8)  }
  0x35   :  { %31 = vsyncmov [#allocation2 + $0x1] }
  0x38   :  { %s32_s9 = vpop.sfrf %31 }
  0x39   :  { %p38_p9 = scmp.ne.s32.totalorder %s32_s9, 0 }
  0x3b   :  { %36 = shalt.err (%p38_p9)  }

</bundles_post_ra>
